<compile_context>
chip_gen: v5e
topology: v5e:2x2
jax: 0.10.0
libtpu: 0.0.40
codegen_flags: <defaults>
</compile_context>

<pallas_src>
import functools

import jax
import jax.numpy as jnp
from jax import lax
from jax.experimental import pallas as pl
from jax.experimental.pallas import tpu as pltpu


# ------------------------------------------------------------------ helpers
def _vmem_params():
    """(vmem_limit_bytes, per-kernel input-tile budget) — generation aware."""
    try:
        cap = int(pltpu.get_tpu_info().vmem_capacity_bytes)
    except Exception:
        cap = 64 * 1024 * 1024  # conservative (v7x-class) fallback
    limit = min(max(cap - 16 * 1024 * 1024, 32 * 1024 * 1024), 100 * 1024 * 1024)
    return limit, limit // 3


# --------------------------------------------- fused pixel-L1 + TV + BCE loss
def _fused_loss_kernel(x_ref, y_ref, c_ref, d_ref, t_ref,
                       pix_ref, tv_ref, adv_ref,
                       acc_pix, acc_tv,
                       *, bc, w, hw, tbc, n_inner,
                       inv_n_pix, inv_n_tvw, inv_n_tvh):
    p = pl.program_id(0)          # parallel bc-tile split (megacore)
    s = pl.program_id(1)          # sequential reduction steps

    @pl.when(s == 0)
    def _init():
        acc_pix[...] = jnp.zeros_like(acc_pix)
        acc_tv[...] = jnp.zeros_like(acc_tv)

    # Upcast in-kernel (inputs may be bf16) -> no extra HBM traffic.
    xt = x_ref[...].astype(jnp.float32)
    yt = y_ref[...].astype(jnp.float32)
    ct = c_ref[...].astype(jnp.float32)
    hw_pad = xt.shape[1]

    # Validity mask for the (possibly ragged / OOB) last bc-tile.
    row = lax.broadcasted_iota(jnp.int32, (tbc, 1), 0) + (p * n_inner + s) * tbc
    row_ok = row < bc

    # Both pixel L1 terms share the same normalizer -> one accumulator.
    pix = jnp.abs(xt - yt) + jnp.abs(xt - ct)

    # TV via XLU roll + cheap VPU masks (no slice materialization).
    lane = lax.broadcasted_iota(jnp.int32, (1, hw_pad), 1)
    s_w = hw_pad - 1          # roll by -1   (next pixel along width)
    s_h = hw_pad - w          # roll by -w   (next pixel along height)
    ct_w = pltpu.roll(ct, s_w, axis=1)
    ct_h = pltpu.roll(ct, s_h, axis=1)
    ln_w = pltpu.roll(lane, s_w, axis=1)
    ln_h = pltpu.roll(lane, s_h, axis=1)
    # Masks derived from the rolled iota: a pair is a valid width-TV term iff
    # the two indices differ by 1 and sit in the same image row; a valid
    # height-TV term iff they differ by exactly w.  Lane-padding (>= hw) and
    # roll wrap-around are excluded.  Robust to the roll direction convention.
    diff_w = ln_w - lane
    diff_h = ln_h - lane
    in_w = (((diff_w == 1) | (diff_w == -1))
            & (jnp.minimum(ln_w, lane) % w != (w - 1))
            & (lane < hw) & (ln_w < hw))
    in_h = (((diff_h == w) | (diff_h == -w))
            & (lane < hw) & (ln_h < hw))
    tv = (jnp.where(in_w, jnp.abs(ct - ct_w), 0.0) * inv_n_tvw
          + jnp.where(in_h, jnp.abs(ct - ct_h), 0.0) * inv_n_tvh)

    # Purely elementwise accumulation; cross-lane reduce deferred to finalize.
    acc_pix[...] += jnp.where(row_ok, pix, 0.0)
    acc_tv[...] += jnp.where(row_ok, tv, 0.0)

    @pl.when(s == pl.num_programs(1) - 1)
    def _finalize():
        pix_ref[...] = (jnp.sum(acc_pix[...]) * inv_n_pix).reshape(1, 1)
        tv_ref[...] = jnp.sum(acc_tv[...]).reshape(1, 1)
        # BCE adversarial loss (tiny) folded in; every parallel slice writes
        # its own (identical) copy so megacore cores never race.
        pd = d_ref[...].astype(jnp.float32)
        tt = t_ref[...].astype(jnp.float32)
        # Match torch.nn.BCELoss: clamp log terms at -100 (assumes d_out in [0,1]).
        log_p = jnp.maximum(jnp.log(pd), -100.0)
        log_1mp = jnp.maximum(jnp.log(1.0 - pd), -100.0)
        adv_ref[...] = jnp.mean(-(tt * log_p + (1.0 - tt) * log_1mp)).reshape(1, 1)


def fused_pixel_tv_bce(x, output, composite, d_out, adv_target):
    b, c, h, w = x.shape
    bc = b * c
    hw = h * w
    hw_pad = 128 * pl.cdiv(hw, 128)           # lane-dense last dim

    x2 = x.reshape(bc, hw)
    y2 = output.reshape(bc, hw)
    c2 = composite.reshape(bc, hw)
    if hw_pad != hw:
        pad = [(0, 0), (0, hw_pad - hw)]
        x2 = jnp.pad(x2, pad)
        y2 = jnp.pad(y2, pad)
        c2 = jnp.pad(c2, pad)
    d2 = d_out.reshape(1, -1)
    t2 = adv_target.reshape(1, -1)
    nb = d2.shape[1]

    in_itemsize = jnp.dtype(x.dtype).itemsize
    vmem_limit, tile_budget = _vmem_params()
    # 3 inputs x 2 pipeline buffers + 2 f32 block-shaped accumulators per row.
    per_row = hw_pad * (3 * 2 * in_itemsize + 2 * 4)
    tbc = max(1, int(tile_budget // per_row))
    if tbc >= bc:
        tbc = bc
    else:
        tbc = max(8, (tbc // 8) * 8)   # block sublane dim: multiple of 8 (or == bc)

    grid_tiles = pl.cdiv(bc, tbc)
    # Split bc-tiles across the two v7x TensorCores when it divides evenly.
    # TODO(synk): odd tile counts currently stay on one core.
    n_par = 2 if (grid_tiles >= 2 and grid_tiles % 2 == 0) else 1
    n_inner = grid_tiles // n_par

    kernel = functools.partial(
        _fused_loss_kernel,
        bc=bc, w=w, hw=hw, tbc=tbc, n_inner=n_inner,
        inv_n_pix=1.0 / float(bc * h * w),
        inv_n_tvw=1.0 / float(max(1, bc * h * (w - 1))),
        inv_n_tvh=1.0 / float(max(1, bc * (h - 1) * w)),
    )

    img_spec = pl.BlockSpec((tbc, hw_pad), lambda p, s: (p * n_inner + s, 0))
    vec_spec = pl.BlockSpec((1, nb), lambda p, s: (0, 0))
    out_spec = pl.BlockSpec((None, 1, 1), lambda p, s: (p, 0, 0))

    pix_parts, tv_parts, adv_parts = pl.pallas_call(
        kernel,
        grid=(n_par, n_inner),
        in_specs=[img_spec, img_spec, img_spec, vec_spec, vec_spec],
        out_specs=[out_spec, out_spec, out_spec],
        out_shape=(jax.ShapeDtypeStruct((n_par, 1, 1), jnp.float32),) * 3,
        scratch_shapes=[pltpu.VMEM((tbc, hw_pad), jnp.float32)] * 2,
        compiler_params=pltpu.CompilerParams(
            dimension_semantics=("parallel", "arbitrary"),
            vmem_limit_bytes=vmem_limit,
        ),
        cost_estimate=pl.CostEstimate(
            flops=int(12 * bc * hw),
            transcendentals=int(2 * nb),
            bytes_accessed=int(3 * bc * hw_pad * in_itemsize + 2 * nb * 4 + 12 * n_par),
        ),
    )(x2, y2, c2, d2, t2)

    return jnp.sum(pix_parts), jnp.sum(tv_parts), adv_parts[0, 0, 0]


# -------------------- style loss for one VGG level (tiled gram accumulation)
def _style_kernel(gt_ref, out_ref, comp_ref, so_ref, sc_ref,
                  acc_gt, acc_out, acc_comp, *, inv_scale, inv_count):
    k = pl.program_id(1)

    @pl.when(k == 0)
    def _init():
        acc_gt[...] = jnp.zeros_like(acc_gt)
        acc_out[...] = jnp.zeros_like(acc_out)
        acc_comp[...] = jnp.zeros_like(acc_comp)

    def gram_partial(m):
        # m: (C, n_tile) in native dtype; MXU matmul with f32 accumulation.
        # TODO(synk): on v5e check the lowered MLIR for an extra vxpose from the
        # minor-dim contraction; if present switch to pl.dot(m, m, trans_b=True).
        return lax.dot_general(m, m, (((1,), (1,)), ((), ())),
                               preferred_element_type=jnp.float32)

    acc_gt[...] += gram_partial(gt_ref[...])
    acc_out[...] += gram_partial(out_ref[...])
    acc_comp[...] += gram_partial(comp_ref[...])

    @pl.when(k == pl.num_programs(1) - 1)
    def _finalize():
        g_gt = acc_gt[...] * inv_scale     # scale = 1/(C*H*W), as in baddbmm
        g_out = acc_out[...] * inv_scale
        g_comp = acc_comp[...] * inv_scale
        so_ref[...] = (jnp.sum(jnp.abs(g_out - g_gt)) * inv_count).reshape(1, 1)
        sc_ref[...] = (jnp.sum(jnp.abs(g_comp - g_gt)) * inv_count).reshape(1, 1)


def style_level(f_gt, f_out, f_comp):
    b, c, h, w = f_gt.shape
    n = h * w
    itemsize = jnp.dtype(f_gt.dtype).itemsize
    vmem_limit, tile_budget = _vmem_params()

    # Spatial tile: multiple of 128, capped by the double-buffered input budget.
    cap_cols = max(128, (int(tile_budget // (3 * 2 * c * itemsize)) // 128) * 128)
    n_tile = min(128 * pl.cdiv(n, 128), cap_cols)
    n_pad = n_tile * pl.cdiv(n, n_tile)       # zero-pad: zeros don't change grams
    kt = n_pad // n_tile

    gt = f_gt.reshape(b, c, n)
    fo = f_out.reshape(b, c, n)
    fc = f_comp.reshape(b, c, n)
    if n_pad != n:
        pad = [(0, 0), (0, 0), (0, n_pad - n)]
        gt = jnp.pad(gt, pad)
        fo = jnp.pad(fo, pad)
        fc = jnp.pad(fc, pad)

    kernel = functools.partial(
        _style_kernel,
        inv_scale=1.0 / float(c * n),          # true (unpadded) H*W
        inv_count=1.0 / float(b * c * c),      # L1Loss mean over (B, C, C)
    )
    feat_spec = pl.BlockSpec((None, c, n_tile), lambda bi, k: (bi, 0, k))
    out_spec = pl.BlockSpec((None, 1, 1), lambda bi, k: (bi, 0, 0))

    so_parts, sc_parts = pl.pallas_call(
        kernel,
        grid=(b, kt),                          # batch axis parallel across cores
        in_specs=[feat_spec, feat_spec, feat_spec],
        out_specs=[out_spec, out_spec],
        out_shape=(jax.ShapeDtypeStruct((b, 1, 1), jnp.float32),) * 2,
        scratch_shapes=[pltpu.VMEM((c, c), jnp.float32)] * 3,
        compiler_params=pltpu.CompilerParams(
            dimension_semantics=("parallel", "arbitrary"),
            vmem_limit_bytes=vmem_limit,
        ),
        cost_estimate=pl.CostEstimate(
            flops=int(3 * 2 * b * c * c * n_pad),
            transcendentals=0,
            bytes_accessed=int(3 * b * c * n_pad * itemsize + 2 * b * 4),
        ),
    )(gt, fo, fc)
    return jnp.sum(so_parts), jnp.sum(sc_parts)


# ------------------------------------------------------- CustomLoss.forward
def custom_loss(x, output, composite, d_out,
                vgg_features_gt, vgg_features_output, vgg_features_composite,
                *, key):
    # PyTorch draws a fresh U(0, 0.3) BCE target inside forward(); JAX needs an
    # explicit PRNG key for the same (functional) behaviour.
    adv_target = jax.random.uniform(key, d_out.shape, jnp.float32, 0.0, 0.3)

    pixel_loss, tv_loss, adversarial_loss = fused_pixel_tv_bce(
        x, output, composite, d_out, adv_target)

    style_loss = jnp.float32(0.0)
    for f_gt, f_composite, f_output in zip(vgg_features_gt,
                                           vgg_features_composite,
                                           vgg_features_output):
        so, sc = style_level(f_gt, f_output, f_composite)
        style_loss = style_loss + so + sc

    total = (10.0 * pixel_loss + 120.0 * style_loss
             + 0.001 * adversarial_loss + 0.0001 * tv_loss)
    return total, pixel_loss, style_loss, adversarial_loss, tv_loss


if __name__ == "__main__":
    key = jax.random.PRNGKey(0)
    keys = jax.random.split(key, 14)

    B, C, H, W = 2, 3, 16, 16
    x = jax.random.uniform(keys[0], (B, C, H, W), jnp.float32)
    output = jax.random.uniform(keys[1], (B, C, H, W), jnp.float32)
    composite = jax.random.uniform(keys[2], (B, C, H, W), jnp.float32)

    # discriminator output in (0, 1) (post-sigmoid)
    d_out = jax.random.uniform(keys[3], (B,), jnp.float32, 0.05, 0.95)

    # three small "VGG" feature levels, NCHW (last two exercise the 128-padding path)
    feat_shapes = [(B, 8, 16, 16), (B, 16, 8, 8), (B, 32, 4, 4)]
    vgg_gt = [jax.random.normal(keys[4 + i], s, jnp.float32)
              for i, s in enumerate(feat_shapes)]
    vgg_out = [jax.random.normal(keys[7 + i], s, jnp.float32)
               for i, s in enumerate(feat_shapes)]
    vgg_comp = [jax.random.normal(keys[10 + i], s, jnp.float32)
                for i, s in enumerate(feat_shapes)]

    total, pixel_l, style_l, adv_l, tv_l = custom_loss(
        x, output, composite, d_out, vgg_gt, vgg_out, vgg_comp, key=keys[13])
    jax.block_until_ready(total)
    print("KERNEL_OK")
</pallas_src>

<mosaic_0001>
module attributes {stable_mosaic.version = 11 : i64} {
  func.func @_fused_loss_kernel(%arg0: i32, %arg1: i32, %arg2: memref<6x256xf32, #tpu.memory_space<vmem>>, %arg3: memref<6x256xf32, #tpu.memory_space<vmem>>, %arg4: memref<6x256xf32, #tpu.memory_space<vmem>>, %arg5: memref<1x2xf32, #tpu.memory_space<vmem>>, %arg6: memref<1x2xf32, #tpu.memory_space<vmem>>, %arg7: memref<1x1x1xf32, #tpu.memory_space<vmem>>, %arg8: memref<1x1x1xf32, #tpu.memory_space<vmem>>, %arg9: memref<1x1x1xf32, #tpu.memory_space<vmem>>, %arg10: memref<6x256xf32, #tpu.memory_space<vmem>>, %arg11: memref<6x256xf32, #tpu.memory_space<vmem>>) attributes {dimension_semantics = [#tpu.dimension_semantics<parallel>, #tpu.dimension_semantics<arbitrary>], iteration_bounds = array<i64: 1, 1>, scalar_prefetch = 0 : i64, scratch_operands = 2 : i64, tpu.core_type = #tpu.core_type<tc>, window_params = [{transform_indices = @transform_0, window_bounds = array<i64: 6, 256>}, {transform_indices = @transform_1, window_bounds = array<i64: 6, 256>}, {transform_indices = @transform_2, window_bounds = array<i64: 6, 256>}, {pipeline_mode = #tpu.pipeline_mode<synchronous>, transform_indices = @transform_3, window_bounds = array<i64: 1, 2>}, {pipeline_mode = #tpu.pipeline_mode<synchronous>, transform_indices = @transform_4, window_bounds = array<i64: 1, 2>}, {transform_indices = @transform_5, window_bounds = array<i64: 1, 1, 1>}, {transform_indices = @transform_6, window_bounds = array<i64: 1, 1, 1>}, {transform_indices = @transform_7, window_bounds = array<i64: 1, 1, 1>}]} {
    %c0_i32 = arith.constant 0 : i32
    %0 = arith.cmpi eq, %arg1, %c0_i32 : i32
    %1 = arith.extui %0 : i1 to i32
    %c0_i32_0 = arith.constant 0 : i32
    %2 = arith.cmpi ne, %1, %c0_i32_0 : i32
    scf.if %2 {
      %cst_34 = arith.constant 0.000000e+00 : f32
      %102 = vector.broadcast %cst_34 : f32 to vector<6x256xf32>
      %c0_35 = arith.constant 0 : index
      %c0_36 = arith.constant 0 : index
      %103 = vector.load %arg10[%c0_35, %c0_36] : memref<6x256xf32, #tpu.memory_space<vmem>>, vector<6x256xf32>
      tpu.vector_store %arg10[%c0_35, %c0_36], %102 {strides = array<i32>} : memref<6x256xf32, #tpu.memory_space<vmem>>, vector<6x256xf32>,
      %cst_37 = arith.constant 0.000000e+00 : f32
      %104 = vector.broadcast %cst_37 : f32 to vector<6x256xf32>
      %c0_38 = arith.constant 0 : index
      %c0_39 = arith.constant 0 : index
      %105 = vector.load %arg11[%c0_38, %c0_39] : memref<6x256xf32, #tpu.memory_space<vmem>>, vector<6x256xf32>
      tpu.vector_store %arg11[%c0_38, %c0_39], %104 {strides = array<i32>} : memref<6x256xf32, #tpu.memory_space<vmem>>, vector<6x256xf32>,
    } else {
    }
    %c0 = arith.constant 0 : index
    %c0_1 = arith.constant 0 : index
    %3 = vector.load %arg2[%c0, %c0_1] : memref<6x256xf32, #tpu.memory_space<vmem>>, vector<6x256xf32>
    %c0_2 = arith.constant 0 : index
    %c0_3 = arith.constant 0 : index
    %4 = vector.load %arg3[%c0_2, %c0_3] : memref<6x256xf32, #tpu.memory_space<vmem>>, vector<6x256xf32>
    %c0_4 = arith.constant 0 : index
    %c0_5 = arith.constant 0 : index
    %5 = vector.load %arg4[%c0_4, %c0_5] : memref<6x256xf32, #tpu.memory_space<vmem>>, vector<6x256xf32>
    %6 = tpu.iota {dimensions = array<i32: 0>} : vector<6x1xi32>
    %c1_i32 = arith.constant 1 : i32
    %7 = arith.muli %arg0, %c1_i32 : i32
    %8 = arith.addi %7, %arg1 : i32
    %c6_i32 = arith.constant 6 : i32
    %9 = arith.muli %8, %c6_i32 : i32
    %10 = vector.broadcast %9 : i32 to vector<6x1xi32>
    %11 = arith.addi %6, %10 : vector<6x1xi32>
    %c6_i32_6 = arith.constant 6 : i32
    %12 = vector.broadcast %c6_i32_6 : i32 to vector<6x1xi32>
    %13 = arith.cmpi slt, %11, %12 : vector<6x1xi32>
    %14 = arith.subf %3, %4 : vector<6x256xf32>
    %15 = math.absf %14 : vector<6x256xf32>
    %16 = arith.subf %3, %5 : vector<6x256xf32>
    %17 = math.absf %16 : vector<6x256xf32>
    %18 = arith.addf %15, %17 : vector<6x256xf32>
    %19 = tpu.iota {dimensions = array<i32: 1>} : vector<1x256xi32>
    %c255_i32 = arith.constant 255 : i32
    %20 = tpu.dynamic_rotate %5 by %c255_i32 dim 1 : vector<6x256xf32>, i32 -> vector<6x256xf32>
    %c240_i32 = arith.constant 240 : i32
    %21 = tpu.dynamic_rotate %5 by %c240_i32 dim 1 : vector<6x256xf32>, i32 -> vector<6x256xf32>
    %c255_i32_7 = arith.constant 255 : i32
    %22 = tpu.dynamic_rotate %19 by %c255_i32_7 dim 1 : vector<1x256xi32>, i32 -> vector<1x256xi32>
    %c240_i32_8 = arith.constant 240 : i32
    %23 = tpu.dynamic_rotate %19 by %c240_i32_8 dim 1 : vector<1x256xi32>, i32 -> vector<1x256xi32>
    %24 = arith.subi %22, %19 : vector<1x256xi32>
    %25 = arith.subi %23, %19 : vector<1x256xi32>
    %c1_i32_9 = arith.constant 1 : i32
    %26 = vector.broadcast %c1_i32_9 : i32 to vector<1x256xi32>
    %27 = arith.cmpi eq, %24, %26 : vector<1x256xi32>
    %c-1_i32 = arith.constant -1 : i32
    %28 = vector.broadcast %c-1_i32 : i32 to vector<1x256xi32>
    %29 = arith.cmpi eq, %24, %28 : vector<1x256xi32>
    %30 = arith.ori %27, %29 : vector<1x256xi1>
    %31 = arith.minsi %22, %19 : vector<1x256xi32>
    %c16_i32 = arith.constant 16 : i32
    %c0_i32_10 = arith.constant 0 : i32
    %32 = arith.cmpi eq, %c16_i32, %c0_i32_10 : i32
    %c1_i32_11 = arith.constant 1 : i32
    %33 = arith.select %32, %c1_i32_11, %c16_i32 : i32
    %34 = vector.broadcast %33 : i32 to vector<1x256xi32>
    %35 = arith.remsi %31, %34 : vector<1x256xi32>
    %c0_i32_12 = arith.constant 0 : i32
    %36 = vector.broadcast %c0_i32_12 : i32 to vector<1x256xi32>
    %37 = arith.cmpi ne, %35, %36 : vector<1x256xi32>
    %c0_i32_13 = arith.constant 0 : i32
    %38 = vector.broadcast %c0_i32_13 : i32 to vector<1x256xi32>
    %39 = arith.cmpi slt, %35, %38 : vector<1x256xi32>
    %c0_i32_14 = arith.constant 0 : i32
    %40 = arith.cmpi slt, %33, %c0_i32_14 : i32
    %41 = vector.broadcast %40 : i1 to vector<1x256xi1>
    %42 = vector.broadcast %41 : vector<1x256xi1> to vector<1x256xi1>
    %43 = arith.xori %39, %42 : vector<1x256xi1>
    %44 = arith.andi %43, %37 : vector<1x256xi1>
    %45 = vector.broadcast %33 : i32 to vector<1x256xi32>
    %46 = arith.addi %35, %45 : vector<1x256xi32>
    %47 = arith.select %44, %46, %35 : vector<1x256xi1>, vector<1x256xi32>
    %c15_i32 = arith.constant 15 : i32
    %48 = vector.broadcast %c15_i32 : i32 to vector<1x256xi32>
    %49 = arith.cmpi ne, %47, %48 : vector<1x256xi32>
    %50 = arith.andi %30, %49 : vector<1x256xi1>
    %c256_i32 = arith.constant 256 : i32
    %51 = vector.broadcast %c256_i32 : i32 to vector<1x256xi32>
    %52 = arith.cmpi slt, %19, %51 : vector<1x256xi32>
    %53 = arith.andi %50, %52 : vector<1x256xi1>
    %c256_i32_15 = arith.constant 256 : i32
    %54 = vector.broadcast %c256_i32_15 : i32 to vector<1x256xi32>
    %55 = arith.cmpi slt, %22, %54 : vector<1x256xi32>
    %56 = arith.andi %53, %55 : vector<1x256xi1>
    %c16_i32_16 = arith.constant 16 : i32
    %57 = vector.broadcast %c16_i32_16 : i32 to vector<1x256xi32>
    %58 = arith.cmpi eq, %25, %57 : vector<1x256xi32>
    %c-16_i32 = arith.constant -16 : i32
    %59 = vector.broadcast %c-16_i32 : i32 to vector<1x256xi32>
    %60 = arith.cmpi eq, %25, %59 : vector<1x256xi32>
    %61 = arith.ori %58, %60 : vector<1x256xi1>
    %c256_i32_17 = arith.constant 256 : i32
    %62 = vector.broadcast %c256_i32_17 : i32 to vector<1x256xi32>
    %63 = arith.cmpi slt, %19, %62 : vector<1x256xi32>
    %64 = arith.andi %61, %63 : vector<1x256xi1>
    %c256_i32_18 = arith.constant 256 : i32
    %65 = vector.broadcast %c256_i32_18 : i32 to vector<1x256xi32>
    %66 = arith.cmpi slt, %23, %65 : vector<1x256xi32>
    %67 = arith.andi %64, %66 : vector<1x256xi1>
    %68 = arith.subf %5, %20 : vector<6x256xf32>
    %69 = math.absf %68 : vector<6x256xf32>
    %cst = arith.constant 0.000000e+00 : f32
    %70 = vector.shape_cast %56 : vector<1x256xi1> to vector<1x256xi1>
    %71 = vector.broadcast %70 : vector<1x256xi1> to vector<6x256xi1>
    %72 = vector.broadcast %cst : f32 to vector<6x256xf32>
    %73 = arith.select %71, %69, %72 : vector<6x256xi1>, vector<6x256xf32>
    %cst_19 = arith.constant 6.94444461E-4 : f32
    %74 = vector.broadcast %cst_19 : f32 to vector<6x256xf32>
    %75 = arith.mulf %73, %74 : vector<6x256xf32>
    %76 = arith.subf %5, %21 : vector<6x256xf32>
    %77 = math.absf %76 : vector<6x256xf32>
    %cst_20 = arith.constant 0.000000e+00 : f32
    %78 = vector.shape_cast %67 : vector<1x256xi1> to vector<1x256xi1>
    %79 = vector.broadcast %78 : vector<1x256xi1> to vector<6x256xi1>
    %80 = vector.broadcast %cst_20 : f32 to vector<6x256xf32>
    %81 = arith.select %79, %77, %80 : vector<6x256xi1>, vector<6x256xf32>
    %cst_21 = arith.constant 6.94444461E-4 : f32
    %82 = vector.broadcast %cst_21 : f32 to vector<6x256xf32>
    %83 = arith.mulf %81, %82 : vector<6x256xf32>
    %84 = arith.addf %75, %83 : vector<6x256xf32>
    %c0_22 = arith.constant 0 : index
    %c0_23 = arith.constant 0 : index
    %85 = vector.load %arg10[%c0_22, %c0_23] : memref<6x256xf32, #tpu.memory_space<vmem>>, vector<6x256xf32>
    %cst_24 = arith.constant 0.000000e+00 : f32
    %86 = vector.shape_cast %13 : vector<6x1xi1> to vector<6x1xi1>
    %87 = vector.broadcast %86 : vector<6x1xi1> to vector<6x256xi1>
    %88 = vector.broadcast %cst_24 : f32 to vector<6x256xf32>
    %89 = arith.select %87, %18, %88 : vector<6x256xi1>, vector<6x256xf32>
    %90 = arith.addf %85, %89 : vector<6x256xf32>
    %c0_25 = arith.constant 0 : index
    %c0_26 = arith.constant 0 : index
    %91 = vector.load %arg10[%c0_25, %c0_26] : memref<6x256xf32, #tpu.memory_space<vmem>>, vector<6x256xf32>
    tpu.vector_store %arg10[%c0_25, %c0_26], %90 {strides = array<i32>} : memref<6x256xf32, #tpu.memory_space<vmem>>, vector<6x256xf32>,
    %c0_27 = arith.constant 0 : index
    %c0_28 = arith.constant 0 : index
    %92 = vector.load %arg11[%c0_27, %c0_28] : memref<6x256xf32, #tpu.memory_space<vmem>>, vector<6x256xf32>
    %cst_29 = arith.constant 0.000000e+00 : f32
    %93 = vector.shape_cast %13 : vector<6x1xi1> to vector<6x1xi1>
    %94 = vector.broadcast %93 : vector<6x1xi1> to vector<6x256xi1>
    %95 = vector.broadcast %cst_29 : f32 to vector<6x256xf32>
    %96 = arith.select %94, %84, %95 : vector<6x256xi1>, vector<6x256xf32>
    %97 = arith.addf %92, %96 : vector<6x256xf32>
    %c0_30 = arith.constant 0 : index
    %c0_31 = arith.constant 0 : index
    %98 = vector.load %arg11[%c0_30, %c0_31] : memref<6x256xf32, #tpu.memory_space<vmem>>, vector<6x256xf32>
    tpu.vector_store %arg11[%c0_30, %c0_31], %97 {strides = array<i32>} : memref<6x256xf32, #tpu.memory_space<vmem>>, vector<6x256xf32>,
    %c0_i32_32 = arith.constant 0 : i32
    %99 = arith.cmpi eq, %arg1, %c0_i32_32 : i32
    %100 = arith.extui %99 : i1 to i32
    %c0_i32_33 = arith.constant 0 : i32
    %101 = arith.cmpi ne, %100, %c0_i32_33 : i32
    scf.if %101 {
      %c0_34 = arith.constant 0 : index
      %c0_35 = arith.constant 0 : index
      %102 = vector.load %arg10[%c0_34, %c0_35] : memref<6x256xf32, #tpu.memory_space<vmem>>, vector<6x256xf32>
      %103 = vector.shape_cast %102 : vector<6x256xf32> to vector<1x6x256xf32>
      %cst_36 = arith.constant dense<0.000000e+00> : vector<1xf32>
      %104 = vector.multi_reduction <add>, %103, %cst_36 [1, 2] : vector<1x6x256xf32> to vector<1xf32>
      %105 = vector.shape_cast %104 : vector<1xf32> to vector<1x1x1xf32>
      %106 = vector.extract %105[0, 0, 0] : f32 from vector<1x1x1xf32>
      %cst_37 = arith.constant 6.51041686E-4 : f32
      %107 = arith.mulf %106, %cst_37 : f32
      %108 = vector.broadcast %107 : f32 to vector<1x1xf32>
      %c0_38 = arith.constant 0 : index
      %c0_39 = arith.constant 0 : index
      %c0_40 = arith.constant 0 : index
      %109 = vector.load %arg7[%c0_38, %c0_39, %c0_40] : memref<1x1x1xf32, #tpu.memory_space<vmem>>, vector<1x1x1xf32>
      %110 = vector.shape_cast %109 : vector<1x1x1xf32> to vector<1x1xf32>
      %111 = vector.shape_cast %108 : vector<1x1xf32> to vector<1x1x1xf32>
      tpu.vector_store %arg7[%c0_38, %c0_39, %c0_40], %111 {strides = array<i32>} : memref<1x1x1xf32, #tpu.memory_space<vmem>>, vector<1x1x1xf32>,
      %c0_41 = arith.constant 0 : index
      %c0_42 = arith.constant 0 : index
      %112 = vector.load %arg11[%c0_41, %c0_42] : memref<6x256xf32, #tpu.memory_space<vmem>>, vector<6x256xf32>
      %113 = vector.shape_cast %112 : vector<6x256xf32> to vector<1x6x256xf32>
      %cst_43 = arith.constant dense<0.000000e+00> : vector<1xf32>
      %114 = vector.multi_reduction <add>, %113, %cst_43 [1, 2] : vector<1x6x256xf32> to vector<1xf32>
      %115 = vector.shape_cast %114 : vector<1xf32> to vector<1x1x1xf32>
      %116 = vector.extract %115[0, 0, 0] : f32 from vector<1x1x1xf32>
      %117 = vector.broadcast %116 : f32 to vector<1x1xf32>
      %c0_44 = arith.constant 0 : index
      %c0_45 = arith.constant 0 : index
      %c0_46 = arith.constant 0 : index
      %118 = vector.load %arg8[%c0_44, %c0_45, %c0_46] : memref<1x1x1xf32, #tpu.memory_space<vmem>>, vector<1x1x1xf32>
      %119 = vector.shape_cast %118 : vector<1x1x1xf32> to vector<1x1xf32>
      %120 = vector.shape_cast %117 : vector<1x1xf32> to vector<1x1x1xf32>
      tpu.vector_store %arg8[%c0_44, %c0_45, %c0_46], %120 {strides = array<i32>} : memref<1x1x1xf32, #tpu.memory_space<vmem>>, vector<1x1x1xf32>,
      %c0_47 = arith.constant 0 : index
      %c0_48 = arith.constant 0 : index
      %121 = vector.load %arg5[%c0_47, %c0_48] : memref<1x2xf32, #tpu.memory_space<vmem>>, vector<1x2xf32>
      %c0_49 = arith.constant 0 : index
      %c0_50 = arith.constant 0 : index
      %122 = vector.load %arg6[%c0_49, %c0_50] : memref<1x2xf32, #tpu.memory_space<vmem>>, vector<1x2xf32>
      %123 = math.log %121 : vector<1x2xf32>
      %cst_51 = arith.constant -1.000000e+02 : f32
      %124 = vector.broadcast %cst_51 : f32 to vector<1x2xf32>
      %125 = arith.maximumf %123, %124 : vector<1x2xf32>
      %cst_52 = arith.constant 1.000000e+00 : f32
      %126 = vector.broadcast %cst_52 : f32 to vector<1x2xf32>
      %127 = arith.subf %126, %121 : vector<1x2xf32>
      %128 = math.log %127 : vector<1x2xf32>
      %cst_53 = arith.constant -1.000000e+02 : f32
      %129 = vector.broadcast %cst_53 : f32 to vector<1x2xf32>
      %130 = arith.maximumf %128, %129 : vector<1x2xf32>
      %131 = arith.mulf %122, %125 : vector<1x2xf32>
      %cst_54 = arith.constant 1.000000e+00 : f32
      %132 = vector.broadcast %cst_54 : f32 to vector<1x2xf32>
      %133 = arith.subf %132, %122 : vector<1x2xf32>
      %134 = arith.mulf %133, %130 : vector<1x2xf32>
      %135 = arith.addf %131, %134 : vector<1x2xf32>
      %cst_55 = arith.constant 0.000000e+00 : f32
      %136 = vector.broadcast %cst_55 : f32 to vector<1x2xf32>
      %137 = arith.subf %136, %135 : vector<1x2xf32>
      %138 = vector.shape_cast %137 : vector<1x2xf32> to vector<1x1x2xf32>
      %cst_56 = arith.constant dense<0.000000e+00> : vector<1xf32>
      %139 = vector.multi_reduction <add>, %138, %cst_56 [1, 2] : vector<1x1x2xf32> to vector<1xf32>
      %140 = vector.shape_cast %139 : vector<1xf32> to vector<1x1x1xf32>
      %141 = vector.extract %140[0, 0, 0] : f32 from vector<1x1x1xf32>
      %cst_57 = arith.constant 2.000000e+00 : f32
      %142 = arith.divf %141, %cst_57 : f32
      %143 = vector.broadcast %142 : f32 to vector<1x1xf32>
      %c0_58 = arith.constant 0 : index
      %c0_59 = arith.constant 0 : index
      %c0_60 = arith.constant 0 : index
      %144 = vector.load %arg9[%c0_58, %c0_59, %c0_60] : memref<1x1x1xf32, #tpu.memory_space<vmem>>, vector<1x1x1xf32>
      %145 = vector.shape_cast %144 : vector<1x1x1xf32> to vector<1x1xf32>
      %146 = vector.shape_cast %143 : vector<1x1xf32> to vector<1x1x1xf32>
      tpu.vector_store %arg9[%c0_58, %c0_59, %c0_60], %146 {strides = array<i32>} : memref<1x1x1xf32, #tpu.memory_space<vmem>>, vector<1x1x1xf32>,
    } else {
    }
    return
  }
  func.func @transform_0(%arg0: i32, %arg1: i32) -> (i32, i32) {
    %c1_i32 = arith.constant 1 : i32
    %0 = arith.muli %arg0, %c1_i32 : i32
    %1 = arith.addi %0, %arg1 : i32
    %c0_i32 = arith.constant 0 : i32
    %c0_i32_0 = arith.constant 0 : i32
    return %1, %c0_i32 : i32, i32
  }
  func.func @transform_1(%arg0: i32, %arg1: i32) -> (i32, i32) {
    %c1_i32 = arith.constant 1 : i32
    %0 = arith.muli %arg0, %c1_i32 : i32
    %1 = arith.addi %0, %arg1 : i32
    %c0_i32 = arith.constant 0 : i32
    %c0_i32_0 = arith.constant 0 : i32
    return %1, %c0_i32 : i32, i32
  }
  func.func @transform_2(%arg0: i32, %arg1: i32) -> (i32, i32) {
    %c1_i32 = arith.constant 1 : i32
    %0 = arith.muli %arg0, %c1_i32 : i32
    %1 = arith.addi %0, %arg1 : i32
    %c0_i32 = arith.constant 0 : i32
    %c0_i32_0 = arith.constant 0 : i32
    return %1, %c0_i32 : i32, i32
  }
  func.func @transform_3(%arg0: i32, %arg1: i32) -> (i32, i32) {
    %c0_i32 = arith.constant 0 : i32
    %c0_i32_0 = arith.constant 0 : i32
    %c0_i32_1 = arith.constant 0 : i32
    return %c0_i32, %c0_i32_0 : i32, i32
  }
  func.func @transform_4(%arg0: i32, %arg1: i32) -> (i32, i32) {
    %c0_i32 = arith.constant 0 : i32
    %c0_i32_0 = arith.constant 0 : i32
    %c0_i32_1 = arith.constant 0 : i32
    return %c0_i32, %c0_i32_0 : i32, i32
  }
  func.func @transform_5(%arg0: i32, %arg1: i32) -> (i32, i32, i32) {
    %c0_i32 = arith.constant 0 : i32
    %c0_i32_0 = arith.constant 0 : i32
    %c0_i32_1 = arith.constant 0 : i32
    return %arg0, %c0_i32, %c0_i32_0 : i32, i32, i32
  }
  func.func @transform_6(%arg0: i32, %arg1: i32) -> (i32, i32, i32) {
    %c0_i32 = arith.constant 0 : i32
    %c0_i32_0 = arith.constant 0 : i32
    %c0_i32_1 = arith.constant 0 : i32
    return %arg0, %c0_i32, %c0_i32_0 : i32, i32, i32
  }
  func.func @transform_7(%arg0: i32, %arg1: i32) -> (i32, i32, i32) {
    %c0_i32 = arith.constant 0 : i32
    %c0_i32_0 = arith.constant 0 : i32
    %c0_i32_1 = arith.constant 0 : i32
    return %arg0, %c0_i32, %c0_i32_0 : i32, i32, i32
  }
}

</mosaic_0001>

<bundles_post_ra>
// kernel: tpu_custom_call.1
= control target key start
LH: loop header
LB: loop body
LE: loop exit
PB: predicated region body
PF: predicated region fallthrough
CT: control target
= control target key end

     0   :  { %13 = vsyncpa [#allocation5], 0  ;;  %s782_s0 = inlined_call_operand.hbm [shape: f32[6,256], index: 0, kind: input, shape index: {}]   ;;  %s783_s1 = inlined_call_operand.hbm [shape: f32[6,256], index: 1, kind: input, shape index: {}]   ;;  %s784_s2 = inlined_call_operand.hbm [shape: f32[6,256], index: 2, kind: input, shape index: {}]   ;;  %s785_s3 = inlined_call_operand.vmem [shape: f32[1,2], index: 3, kind: input, shape index: {}]   ;;  %s786_s4 = inlined_call_operand.vmem [shape: f32[1,2], index: 4, kind: input, shape index: {}]   ;;  %s787_s5 = inlined_call_operand.hbm [shape: f32[1,1,1], index: 5, kind: output, shape index: {0}]   ;;  %s788_s6 = inlined_call_operand.hbm [shape: f32[1,1,1], index: 6, kind: output, shape index: {1}]   ;;  %s789_s7 = inlined_call_operand.hbm [shape: f32[1,1,1], index: 7, kind: output, shape index: {2}]  }
   0x1   :  { %14 = vsyncpa [#allocation8], 0 }
   0x2   :  { %15 = vsyncpa [#allocation6], 0  ;;  %s41_s26 = sshll.u32 %s783_s1, 4  ;;  %s42_s26 = int_to_ptr.hbm [resolvable:$true] %s41_s26 }
   0x3   :  { %16 = vsyncpa [#allocation12], 0  ;;  %s551_s27 = smov [#allocation7]   ;;  %s26_s8 = sshll.u32 %s782_s0, 4  ;;  %s27_s8 = int_to_ptr.hbm [resolvable:$true] %s26_s8 }
   0x4   :  { %s43_s28 = sshll.u32 %s551_s27, 4  ;;  %s552_s9 = smov [#allocation4]   ;;  %s44_s28 = int_to_ptr.vmem [resolvable:$true] %s43_s28 }
   0x5   :  { %46 = dma.hbm_to_vmem [thread:$0]  %s42_s26, 256, %s44_s28, [#allocation8]  }
   0x6   :  { %s28_s10 = sshll.u32 %s552_s9, 4  ;;  %s56_s13 = sshll.u32 %s784_s2, 4  ;;  %s29_s10 = int_to_ptr.vmem [resolvable:$true] %s28_s10  ;;  %s57_s13 = int_to_ptr.hbm [resolvable:$true] %s56_s13 }
   0x7   :  { %31 = dma.hbm_to_vmem [thread:$0]  %s27_s8, 256, %s29_s10, [#allocation5]  }
   0x8   :  { %s553_s1 = smov [#allocation9]  }
   0x9   :  { %s58_s14 = sshll.u32 %s553_s1, 4  ;;  %s59_s14 = int_to_ptr.vmem [resolvable:$true] %s58_s14 }
   0xa   :  { %61 = dma.hbm_to_vmem [thread:$0]  %s57_s13, 256, %s59_s14, [#allocation8]  }
   0xb   :  { %543 = dma.done.wait [#allocation5], 256  }
   0xc   :  { %544 = vsyncadd [#allocation5], 4294967040  ;;  %v95_v0 = vlaneseq }
   0xd   :  { %545 = dma.done.wait [#allocation8], 512  }
   0xe   :  { %546 = vsyncadd [#allocation8], 4294966784  ;;  %v611_v1 = vand.u32 127, %v95_v0  ;;  %s554_s0 = smov 112   ;;  %s555_s15 = smov 127   ;;  %v556_v17 = vmov 0.0  }
   0xf   :  { %v618_v3 = vld [vmem:[#allocation9] sm:$0x3f]  ;;  %v623_v4 = vld [vmem:[#allocation9 + $0x8] sm:$0x3f]  ;;  %v92_v6 = vld [vmem:[#allocation7 + $0x8] sm:$0x3f] }
  0x10   :  { %135 = vrot.lane.b32.xlu1 %v611_v1, %s554_s0  ;;  %129 = vrot.lane.b32.xlu0 %v611_v1, %s555_s15  ;;  %v616_v2 = vadd.s32 128, %v611_v1  ;;  %v90_v5 = vld [vmem:[#allocation4 + $0x8] sm:$0x3f]  ;;  %v89_v7 = vld [vmem:[#allocation4] sm:$0x3f]  ;;  %v633_v21 = vshrl.u32 %v95_v0, 7 }
  0x11   :  { %115 = vrot.lane.b32.xlu2 %v618_v3, %s555_s15  ;;  %v91_v8 = vld [vmem:[#allocation7] sm:$0x3f]  ;;  %v103_v9 = vsub.f32 %v90_v5, %v92_v6  ;;  %v107_v10 = vsub.f32 %v90_v5, %v623_v4  ;;  %v106_v12 = vsub.f32 %v89_v7, %v618_v3  ;;  %85 = vst [vmem:[#allocation2] sm:$0x3f] %v556_v17  ;;  %v289_v18 = vld [vmem:[%s785_s3] sm:$0x1] }
  0x12   :  { %v102_v11 = vsub.f32 %v89_v7, %v91_v8  ;;  %86 = vst [vmem:[#allocation2 + $0x8] sm:$0x3f] %v556_v17  ;;  %393 = vlog2.f32 %v289_v18  ;;  %v294_v22 = vsub.f32 1.0, %v289_v18  ;;  %vm790_vm0 = vcmp.lt.s32.totalorder %v633_v21, 6  ;;  %v290_v46 = vld [vmem:[%s786_s4] sm:$0x1] }
  0x13   :  { %v105_v13 = vand.u32 2147483647, %v103_v9  ;;  %v109_v14 = vand.u32 2147483647, %v107_v10  ;;  %v108_v16 = vand.u32 2147483647, %v106_v12 }
  0x14   :  { %v104_v15 = vand.u32 2147483647, %v102_v11  ;;  %87 = vst [vmem:[#allocation3 + $0x8] sm:$0x3f] %v556_v17  ;;  %395 = vlog2.f32 %v294_v22  ;;  %vm126_vm1 = vcmp.lt.s32.totalorder %v611_v1, 112  ;;  %vm791_vm2 = vcmp.lt.s32.totalorder %v611_v1, 127 }
  0x15   :  { %v111_v19 = vadd.f32 %v109_v14, %v105_v13  ;;  %88 = vst [vmem:[#allocation3] sm:$0x3f] %v556_v17  ;;  %v299_v54 = vsub.f32 1.0, %v290_v46  ;;  %v557_v17 = vmov 0   ;;  %s559_s4 = smov [#allocation10]   ;;  %s332_s21 = sshll.u32 %s787_s5, 4  ;;  %s333_s21 = int_to_ptr.hbm [resolvable:$true] %s332_s21 }
  0x16   :  { %v110_v20 = vadd.f32 %v108_v16, %v104_v15  ;;  %s330_s18 = sshll.u32 %s559_s4, 4  ;;  %s560_s24 = smov [#allocation11]   ;;  %s331_s18 = int_to_ptr.vmem [resolvable:$true] %s330_s18 }
  0x17   :  { %v238_v27 = vsel %vm790_vm0, %v111_v19, 0.0  ;;  %s341_s25 = sshll.u32 %s560_s24, 4  ;;  %s343_s28 = sshll.u32 %s788_s6, 4  ;;  %s342_s25 = int_to_ptr.vmem [resolvable:$true] %s341_s25  ;;  %s344_s28 = int_to_ptr.hbm [resolvable:$true] %s343_s28 }
  0x18   :  { %137 = vrot.lane.b32.xlu1 %v616_v2, %s554_s0  ;;  %131 = vrot.lane.b32.xlu0 %v616_v2, %s555_s15  ;;  %v233_v25 = vld [vmem:[#allocation2] sm:$0x3f]  ;;  %v237_v26 = vsel %vm790_vm0, %v110_v20, 0.0  ;;  %v394_v30 = vpop.eup %393  ;;  %s561_s29 = smov [#allocation13]   ;;  %s354_s10 = sshll.u32 %s789_s7, 4  ;;  %s355_s10 = int_to_ptr.hbm [resolvable:$true] %s354_s10 }
  0x19   :  { %117 = vrot.lane.b32.xlu2 %v623_v4, %s555_s15  ;;  %v234_v28 = vld [vmem:[#allocation2 + $0x8] sm:$0x3f]  ;;  %v239_v29 = vadd.f32 %v237_v26, %v233_v25  ;;  %v292_v35 = vmul.f32 0.6931472, %v394_v30  ;;  %s352_s30 = sshll.u32 %s561_s29, 4  ;;  %s353_s30 = int_to_ptr.vmem [resolvable:$true] %s352_s30 }
  0x1a   :  { %v240_v32 = vadd.f32 %v238_v27, %v234_v28  ;;  %v396_v36 = vpop.eup %395 }
  0x1b   :  { %241 = vst [vmem:[#allocation2] sm:$0x3f] %v239_v29  ;;  %v296_v43 = vmul.f32 0.6931472, %v396_v36  ;;  %v293_v47 = vmax.f32 %v292_v35, -100.0 }
  0x1c   :  { %242 = vst [vmem:[#allocation2 + $0x8] sm:$0x3f] %v240_v32 }
  0x1d   :  { %v297_v53 = vmax.f32 %v296_v43, -100.0  ;;  %v298_v57 = vmul.f32 %v293_v47, %v290_v46 }
  0x20   :  { %124 = vrot.lane.b32.xlu1 %v623_v4, %s554_s0  ;;  %122 = vrot.lane.b32.xlu0 %v618_v3, %s554_s0 }
  0x22   :  { %v254_v5 = vld [vmem:[#allocation2] sm:$0x3f] }
  0x23   :  { %v255_v15 = vld [vmem:[#allocation2 + $0x8] sm:$0x3f] }
  0x6b   :  { %v640_v31 = vpop.permute.xlu2 %115 }
  0x73   :  { %v118_v52 = vpop.permute.xlu2 %117 }
  0x74   :  { %v686_v63 = vsel %vm791_vm2, %v640_v31, %v118_v52 }
  0x82   :  { %v136_v23 = vpop.permute.xlu1 %135  ;;  %v130_v24 = vpop.permute.xlu0 %129 }
  0x8a   :  { %v138_v33 = vpop.permute.xlu1 %137  ;;  %v132_v34 = vpop.permute.xlu0 %131 }
  0x8b   :  { %v139_v37 = vsel %vm126_vm1, %v136_v23, %v138_v33  ;;  %v140_v38 = vsel %vm126_vm1, %v138_v33, %v136_v23  ;;  %v650_v39 = vsel %vm791_vm2, %v130_v24, %v132_v34  ;;  %v654_v40 = vsel %vm791_vm2, %v132_v34, %v130_v24 }
  0x8c   :  { %v143_v41 = vsub.s32 %v139_v37, %v611_v1  ;;  %vm151_vm3 = vcmp.lt.s32.totalorder %v650_v39, %v611_v1  ;;  %vm153_vm4 = vcmp.lt.s32.totalorder %v654_v40, %v616_v2  ;;  %v144_v42 = vsub.s32 %v140_v38, %v616_v2 }
  0x8d   :  { %v141_v44 = vsub.s32 %v650_v39, %v611_v1  ;;  %v666_v45 = vsub.s32 %v654_v40, %v616_v2  ;;  %v152_v48 = vsel %vm151_vm3, %v650_v39, %v611_v1  ;;  %v154_v49 = vsel %vm153_vm4, %v654_v40, %v616_v2 }
  0x8e   :  { %vm191_vm5 = vcmp.eq.s32.totalorder %v143_v41, 16  ;;  %vm193_vm6 = vcmp.eq.s32.totalorder %v143_v41, 4294967280  ;;  %vm155_vm7 = vcmp.lt.s32.totalorder %v152_v48, 0  ;;  %v156_v50 = vsub.s32 0, %v152_v48 }
  0x8f   :  { %vm162_vm8 = vcmp.lt.s32.totalorder %v154_v49, 0  ;;  %v163_v51 = vsub.s32 0, %v154_v49  ;;  %vm192_vm9 = vcmp.eq.s32.totalorder %v144_v42, 16  ;;  %vm194_vm10 = vcmp.eq.s32.totalorder %v144_v42, 4294967280  ;;  %vm679_vm11 = vmor %vm191_vm5, %vm193_vm6 }
  0x90   :  { %v157_v55 = vsel %vm155_vm7, %v156_v50, %v152_v48  ;;  %vm688_vm12 = vmor %vm192_vm9, %vm194_vm10  ;;  %vm199_vm13 = vcmp.lt.s32.totalorder %v139_v37, 256  ;;  %vm200_vm14 = vcmp.lt.s32.totalorder %v140_v38, 256  ;;  %vm145_vm15 = vcmp.eq.s32.totalorder %v141_v44, 1 }
  0x91   :  { %v164_v56 = vsel %vm162_vm8, %v163_v51, %v154_v49  ;;  %v159_v59 = vand.u32 15, %v157_v55  ;;  %v300_v2 = vmul.f32 %v299_v54, %v297_v53  ;;  %vm146_vm3 = vcmp.eq.s32.totalorder %v666_v45, 1  ;;  %vm695_vm5 = vmand %vm679_vm11, %vm199_vm13  ;;  %v243_v55 = vld [vmem:[#allocation3 + $0x8] sm:$0x3f] }
  0x92   :  { %v166_v60 = vand.u32 15, %v164_v56  ;;  %v125_v61 = vpop.permute.xlu1 %124  ;;  %v123_v62 = vpop.permute.xlu0 %122  ;;  %vm147_vm4 = vcmp.eq.s32.totalorder %v141_v44, 4294967295  ;;  %vm148_vm6 = vcmp.eq.s32.totalorder %v666_v45, 4294967295  ;;  %vm256_vm9 = vcmask 1045504   ;;  %vm704_vm10 = vmand %vm688_vm12, %vm200_vm14 }
  0x93   :  { %v160_v6 = vsub.s32 0, %v159_v59  ;;  %v127_v9 = vsel %vm126_vm1, %v123_v62, %v125_v61  ;;  %v301_v10 = vadd.f32 %v300_v2, %v298_v57  ;;  %v128_v14 = vsel %vm126_vm1, %v125_v61, %v123_v62  ;;  %v244_v57 = vld [vmem:[#allocation3] sm:$0x3f] }
  0x94   :  { %v167_v7 = vsub.s32 0, %v166_v60  ;;  %v257_v16 = vsel %vm256_vm9, %v254_v5, 0.0  ;;  %v221_v18 = vsel %vm695_vm5, 1, %v557_v17  ;;  %v222_v23 = vsel %vm704_vm10, 1, %v557_v17 }
  0x95   :  { %v161_v12 = vsel %vm155_vm7, %v160_v6, %v159_v59  ;;  %vm303_vm7 = vcmask 8192   ;;  %v217_v24 = vsub.f32 %v618_v3, %v127_v9  ;;  %v302_v25 = vsub.f32 0.0, %v301_v10 }
  0x96   :  { %v168_v13 = vsel %vm162_vm8, %v167_v7, %v166_v60  ;;  %vm169_vm11 = vcmp.ne.s32.totalorder %v161_v12, 0  ;;  %vm171_vm0 = vcmp.lt.s32.totalorder %v161_v12, 0  ;;  %v175_v20 = vadd.s32 16, %v161_v12  ;;  %vm725_vm8 = vmor %vm145_vm15, %vm147_vm4 }
  0x97   :  { %vm170_vm13 = vcmp.ne.s32.totalorder %v168_v13, 0  ;;  %vm172_vm2 = vcmp.lt.s32.totalorder %v168_v13, 0  ;;  %vm715_vm12 = vmand %vm171_vm0, %vm169_vm11  ;;  %v176_v22 = vadd.s32 16, %v168_v13  ;;  %v258_v26 = vsel %vm256_vm9, %v255_v15, 0.0 }
  0x98   :  { %vm174_vm1 = vmand %vm172_vm2, %vm170_vm13  ;;  %v177_v28 = vsel %vm715_vm12, %v175_v20, %v161_v12  ;;  %v218_v30 = vsub.f32 %v623_v4, %v128_v14  ;;  %v259_v32 = vadd.f32 %v258_v26, %v257_v16  ;;  %vm810_vm15 = vcmp.lt.s32.totalorder %v611_v1, 127 }
  0x99   :  { %v178_v29 = vsel %vm174_vm1, %v176_v22, %v168_v13  ;;  %vm736_vm0 = vmor %vm146_vm3, %vm148_vm6  ;;  %vm740_vm2 = vcmp.ne.s32.totalorder %v177_v28, 15  ;;  %v121_v36 = vsel %vm810_vm15, %v118_v52, %v640_v31  ;;  %v304_v37 = vsel %vm303_vm7, %v302_v25, 0.0 }
  0x9a   :  { %vm744_vm14 = vcmp.ne.s32.totalorder %v178_v29, 15  ;;  %v223_v38 = vperm.slane %v221_v18, 0  ;;  %vm181_vm3 = vmand %vm725_vm8, %vm740_vm2  ;;  %305 = vadd.xlane.f32.xlu1 %v304_v37  ;;  %260 = vadd.xlane.f32.xlu2 %v259_v32  ;;  %v224_v41 = vperm.slane %v222_v23, 0  ;;  %vm187_vm5 = vcmp.lt.s32.totalorder %v650_v39, 256 }
  0x9b   :  { %vm182_vm4 = vmand %vm736_vm0, %vm744_vm14  ;;  %v219_v42 = vand.u32 2147483647, %v217_v24  ;;  %v203_v1 = vsub.f32 %v618_v3, %v686_v63  ;;  %vm188_vm6 = vcmp.lt.s32.totalorder %v654_v40, 256  ;;  %v220_v31 = vand.u32 2147483647, %v218_v30 }
  0x9c   :  { %vm189_vm10 = vmand %vm181_vm3, %vm187_vm5  ;;  %v204_v43 = vsub.f32 %v623_v4, %v121_v36  ;;  %vm225_vm13 = vcmp.eq.s32.totalorder %v223_v38, 1  ;;  %vm226_vm12 = vcmp.eq.s32.totalorder %v224_v41, 1  ;;  %vm811_vm8 = vcmp.lt.s32.totalorder %v633_v21, 6 }
  0x9d   :  { %vm190_vm11 = vmand %vm182_vm4, %vm188_vm6  ;;  %v207_v44 = vsel %vm189_vm10, 1, %v557_v17  ;;  %v227_v47 = vsel %vm225_vm13, %v219_v42, 0.0  ;;  %v205_v49 = vand.u32 2147483647, %v203_v1  ;;  %v228_v39 = vsel %vm226_vm12, %v220_v31, 0.0 }
  0x9e   :  { %v208_v45 = vsel %vm190_vm11, 1, %v557_v17  ;;  %v209_v46 = vperm.slane %v207_v44, 0  ;;  %v206_v50 = vand.u32 2147483647, %v204_v43  ;;  %v229_v51 = vmul.f32 0.00069444446, %v227_v47  ;;  %vm812_vm0 = vmmov %vm811_vm8 }
  0x9f   :  { %v210_v48 = vperm.slane %v208_v45, 0  ;;  %v230_v53 = vmul.f32 0.00069444446, %v228_v39  ;;  %v558_v12 = vmov 2.0   ;;  %vm271_vm2 = vcmask 0  }
  0xa0   :  { %vm211_vm7 = vcmp.eq.s32.totalorder %v209_v46, 1  ;;  %397 = vrcp.f32 %v558_v12 }
  0xa1   :  { %vm212_vm1 = vcmp.eq.s32.totalorder %v210_v48, 1  ;;  %v213_v3 = vsel %vm211_vm7, %v205_v49, 0.0 }
  0xa2   :  { %v214_v40 = vsel %vm212_vm1, %v206_v50, 0.0  ;;  %v215_v52 = vmul.f32 0.00069444446, %v213_v3 }
  0xa3   :  { %v216_v54 = vmul.f32 0.00069444446, %v214_v40 }
  0xa4   :  { %v231_v4 = vadd.f32 %v229_v51, %v215_v52 }
  0xa5   :  { %v232_v56 = vadd.f32 %v230_v53, %v216_v54 }
  0xa6   :  { %v245_v58 = vsel %vm811_vm8, %v231_v4, 0.0  ;;  %v398_v15 = vpop.eup %397 }
  0xa7   :  { %v246_v59 = vsel %vm812_vm0, %v232_v56, 0.0  ;;  %v247_v60 = vadd.f32 %v245_v58, %v243_v55  ;;  %v315_v17 = vmul.f32 2.0, %v398_v15 }
  0xa8   :  { %v248_v61 = vadd.f32 %v246_v59, %v244_v57 }
  0xa9   :  { %249 = vst [vmem:[#allocation3 + $0x8] sm:$0x3f] %v247_v60  ;;  %v316_v20 = vsub.f32 1.0, %v315_v17 }
  0xaa   :  { %250 = vst [vmem:[#allocation3] sm:$0x3f] %v248_v61 }
  0xab   :  { %v317_v25 = vmul.f32 %v398_v15, %v316_v20 }
  0xad   :  { %v318_v29 = vadd.f32 %v398_v15, %v317_v25 }
  0xb0   :  { %v273_v62 = vld [vmem:[#allocation3 + $0x8] sm:$0x3f] }
  0xb1   :  { %v274_v63 = vld [vmem:[#allocation3] sm:$0x3f]  ;;  %v275_v0 = vsel %vm256_vm9, %v273_v62, 0.0 }
  0xb2   :  { %v276_v2 = vsel %vm256_vm9, %v274_v63, 0.0  ;;  %vm319_vm9 = vweird.f32 %v398_v15 }
  0xb3   :  { %v277_v5 = vadd.f32 %v276_v2, %v275_v0  ;;  %v320_v34 = vsel %vm319_vm9, %v398_v15, %v318_v29 }
  0xb5   :  { %278 = vadd.xlane.f32.xlu0 %v277_v5 }
 0x10d   :  { %v261_v6 = vpop.xlane.xlu2 %260  ;;  %v306_v13 = vpop.xlane.xlu1 %305 }
 0x10e   :  { %v262_v7 = vrot.slane %v261_v6, 4  ;;  %v307_v14 = vrot.slane %v306_v13, 4 }
 0x110   :  { %v263_v8 = vadd.f32 %v262_v7, %v261_v6  ;;  %v308_v16 = vadd.f32 %v307_v14, %v306_v13 }
 0x112   :  { %v264_v9 = vrot.slane %v263_v8, 2  ;;  %v309_v18 = vrot.slane %v308_v16, 2 }
 0x114   :  { %v265_v10 = vadd.f32 %v264_v9, %v263_v8  ;;  %v310_v24 = vadd.f32 %v309_v18, %v308_v16 }
 0x116   :  { %v266_v11 = vrot.slane %v265_v10, 1  ;;  %v311_v28 = vrot.slane %v310_v24, 1 }
 0x118   :  { %v267_v21 = vadd.f32 %v266_v11, %v265_v10  ;;  %v312_v33 = vadd.f32 %v311_v28, %v310_v24 }
 0x11a   :  { %374 = vpush %v267_v21 }
 0x128   :  { %v279_v19 = vpop.xlane.xlu0 %278 }
 0x129   :  { %v280_v22 = vrot.slane %v279_v19, 4 }
 0x12b   :  { %v281_v23 = vadd.f32 %v280_v22, %v279_v19 }
 0x12d   :  { %v282_v26 = vrot.slane %v281_v23, 2 }
 0x12f   :  { %v283_v27 = vadd.f32 %v282_v26, %v281_v23 }
 0x131   :  { %v284_v30 = vrot.slane %v283_v27, 1 }
 0x133   :  { %v285_v32 = vadd.f32 %v284_v30, %v283_v27 }
 0x135   :  { %376 = vpush %v285_v32 }
 0x136   :  { %378 = vpush %v312_v33 }
 0x137   :  { %380 = vpush %v320_v34 }
 0x14b   :  { %s375_s22 = spop %374 }
 0x14c   :  { %s269_s23 = smul.f32 0.0006510417, %s375_s22 }
 0x14e   :  { %v270_v35 = vstv %s269_s23 }
 0x14f   :  { %272 = vst.msk [vmem:[#allocation10] sm:$0x1] %vm271_vm2, %v270_v35 }
 0x150   :  { %335 = dma.vmem_to_hbm [thread:$0]  %s331_s18, 16, %s333_s21, [#allocation6]  }
 0x166   :  { %s377_s8 = spop %376 }
 0x167   :  { %v287_v36 = vstv %s377_s8  ;;  %s379_s11 = spop %378 }
 0x168   :  { %288 = vst.msk [vmem:[#allocation11] sm:$0x1] %vm271_vm2, %v287_v36  ;;  %s381_s12 = spop %380 }
 0x169   :  { %s322_s13 = smul.f32 %s381_s12, %s379_s11 }
 0x16a   :  { %346 = dma.vmem_to_hbm [thread:$0]  %s342_s25, 16, %s344_s28, [#allocation12]  }
 0x16b   :  { %v323_v37 = vstv %s322_s13 }
 0x16c   :  { %324 = vst.msk [vmem:[#allocation13] sm:$0x1] %vm271_vm2, %v323_v37 }
 0x16d   :  { %357 = dma.vmem_to_hbm [thread:$0]  %s353_s30, 16, %s355_s10, [#allocation12]  }
 0x16e   :  { %547 = dma.done.wait [#allocation6], 16  }
 0x16f   :  { %548 = vsyncadd [#allocation6], 4294967280 }
 0x170   :  { %549 = dma.done.wait [#allocation12], 32  }
 0x171   :  { %550 = vsyncadd [#allocation12], 4294967264 }
 0x172   :  { %370 = vsyncpa [#allocation5], 1 }
 0x173   :  { %371 = vsyncpa [#allocation8], 1 }
 0x174   :  { %372 = vsyncpa [#allocation6], 1 }
 0x175   :  { %373 = vsyncpa [#allocation12], 1 }

</bundles_post_ra>
